<compile_context>
chip_gen: v6e
topology: v6e:2x2x1
jax: 0.10.0
libtpu: 0.0.40
codegen_flags: <defaults>
</compile_context>

<pallas_src>
import jax
import jax.numpy as jnp
from jax.experimental import pallas as pl
from jax.experimental.pallas import tpu as pltpu

EPS = 1e-6
LANES = 128


def _make_dice_kernel(n_rows, rows_tile, num_k):
    """Build the kernel closure for a given (static) row count / tiling."""
    needs_mask = (n_rows % rows_tile) != 0

    def kernel(p_ref, t_ref, o_ref, inter_acc, union_acc):
        k = pl.program_id(1)  # reduction (row-tile) axis

        @pl.when(k == 0)
        def _():
            inter_acc[...] = jnp.zeros_like(inter_acc)
            union_acc[...] = jnp.zeros_like(union_acc)

        # (1, rows_tile, 128) block -> (rows_tile, 128) tile, accumulate in f32.
        p = p_ref[0].astype(jnp.float32)
        t = t_ref[0].astype(jnp.float32)

        if needs_mask:
            # Mask rows beyond the true row count (last, possibly partial, tile).
            row = k * rows_tile + jax.lax.broadcasted_iota(
                jnp.int32, (rows_tile, LANES), 0
            )
            valid = row < n_rows
            p = jnp.where(valid, p, 0.0)
            t = jnp.where(valid, t, 0.0)

        # Lane-wide partial sums; only sublane/VPU work per step (cheap, hidden
        # under the DMA).  union only needs sum(p) + sum(t) == sum(p + t).
        inter_acc[...] += jnp.sum(p * t, axis=0, keepdims=True)
        union_acc[...] += jnp.sum(p + t, axis=0, keepdims=True)

        @pl.when(k == num_k - 1)
        def _():
            # Single cross-lane reduce in the epilogue.
            inter = jnp.sum(inter_acc[...]) + EPS
            union = jnp.sum(union_acc[...]) + EPS
            coeff = 2.0 * inter / union
            # Lane-dense (128-wide) output write; wrapper picks lane 0.
            o_ref[...] = jnp.broadcast_to(coeff, (1, 1, LANES)).astype(o_ref.dtype)

    return kernel


def dice_coeff(pred, target, *, rows_tile=4096):
    assert pred.shape == target.shape
    b = pred.shape[0]

    # Flatten exactly like torch .view(b, -1); keep the native dtype in HBM.
    p = pred.reshape(b, -1)
    t = target.reshape(b, -1)
    n = p.shape[1]

    # Only pad to a 128-lane multiple when strictly necessary (sum-neutral).
    # TODO(synk): if N % 128 != 0 this still copies the tensors once; push the
    #             128-alignment to the data producer to avoid it entirely.
    n_pad = pl.cdiv(n, LANES) * LANES
    if n_pad != n:
        p = jnp.pad(p, ((0, 0), (0, n_pad - n)))
        t = jnp.pad(t, ((0, 0), (0, n_pad - n)))

    r = n_pad // LANES  # true number of 128-lane rows per batch element

    # Row-tile: multiple of 8 sublanes, no larger than needed, capped so that
    # 2 inputs x 2 buffers x block stays well under every scoped-VMEM default
    # (4096 rows x 128 lanes x 4 B = 2 MiB per f32 block -> 8 MiB total).
    r8 = ((r + 7) // 8) * 8
    rows_tile = max(8, min((rows_tile // 8) * 8, r8))
    num_k = pl.cdiv(r, rows_tile)

    p3 = p.reshape(b, r, LANES)
    t3 = t.reshape(b, r, LANES)

    out = pl.pallas_call(
        _make_dice_kernel(r, rows_tile, num_k),
        out_shape=jax.ShapeDtypeStruct((b, 1, LANES), jnp.float32),
        grid_spec=pltpu.PrefetchScalarGridSpec(
            num_scalar_prefetch=0,
            grid=(b, num_k),  # batch first (parallel), reduction axis last
            in_specs=[
                pl.BlockSpec((1, rows_tile, LANES), lambda i, k: (i, k, 0)),
                pl.BlockSpec((1, rows_tile, LANES), lambda i, k: (i, k, 0)),
            ],
            out_specs=pl.BlockSpec((1, 1, LANES), lambda i, k: (i, 0, 0)),
            scratch_shapes=[
                pltpu.VMEM((1, LANES), jnp.float32),  # inter accumulator
                pltpu.VMEM((1, LANES), jnp.float32),  # union accumulator
            ],
        ),
        compiler_params=pltpu.CompilerParams(
            dimension_semantics=("parallel", "arbitrary"),
        ),
    )(p3, t3)

    return out[:, 0, 0]  # shape (B,), matches torch output


def dice_coeff_ref(pred, target):
    b = pred.shape[0]
    p = pred.reshape(b, -1).astype(jnp.float32)
    t = target.reshape(b, -1).astype(jnp.float32)
    inter = (p * t).sum(axis=1) + EPS
    union = p.sum(axis=1) + t.sum(axis=1) + EPS
    return 2.0 * inter / union


if __name__ == "__main__":
    key = jax.random.PRNGKey(0)
    k1, k2 = jax.random.split(key)
    B, C, H, W = 2, 4, 16, 16
    pred = jax.nn.sigmoid(jax.random.normal(k1, (B, C, H, W), dtype=jnp.float32))
    target = (jax.random.uniform(k2, (B, C, H, W)) > 0.5).astype(jnp.float32)

    out = jax.block_until_ready(dice_coeff(pred, target))
    ref = dice_coeff_ref(pred, target)

    assert out.shape == (B,)
    assert jnp.allclose(out, ref, rtol=1e-5, atol=1e-6), (out, ref)

    print("KERNEL_OK")
</pallas_src>

<mosaic_0001>
module attributes {stable_mosaic.version = 11 : i64} {
  func.func @kernel(%arg0: i32, %arg1: i32, %arg2: memref<1x8x128xf32, #tpu.memory_space<vmem>>, %arg3: memref<1x8x128xf32, #tpu.memory_space<vmem>>, %arg4: memref<1x1x128xf32, #tpu.memory_space<vmem>>, %arg5: memref<1x128xf32, #tpu.memory_space<vmem>>, %arg6: memref<1x128xf32, #tpu.memory_space<vmem>>) attributes {dimension_semantics = [#tpu.dimension_semantics<parallel>, #tpu.dimension_semantics<arbitrary>], iteration_bounds = array<i64: 2, 1>, scalar_prefetch = 0 : i64, scratch_operands = 2 : i64, tpu.core_type = #tpu.core_type<tc>, window_params = [{transform_indices = @transform_0, window_bounds = array<i64: 1, 8, 128>}, {transform_indices = @transform_1, window_bounds = array<i64: 1, 8, 128>}, {transform_indices = @transform_2, window_bounds = array<i64: 1, 1, 128>}]} {
    %c0_i32 = arith.constant 0 : i32
    %0 = arith.cmpi eq, %arg1, %c0_i32 : i32
    %1 = arith.extui %0 : i1 to i32
    %c0_i32_0 = arith.constant 0 : i32
    %2 = arith.cmpi ne, %1, %c0_i32_0 : i32
    scf.if %2 {
      %cst_17 = arith.constant 0.000000e+00 : f32
      %22 = vector.broadcast %cst_17 : f32 to vector<1x128xf32>
      %c0_18 = arith.constant 0 : index
      %c0_19 = arith.constant 0 : index
      %23 = vector.load %arg5[%c0_18, %c0_19] : memref<1x128xf32, #tpu.memory_space<vmem>>, vector<1x128xf32>
      tpu.vector_store %arg5[%c0_18, %c0_19], %22 {strides = array<i32>} : memref<1x128xf32, #tpu.memory_space<vmem>>, vector<1x128xf32>,
      %cst_20 = arith.constant 0.000000e+00 : f32
      %24 = vector.broadcast %cst_20 : f32 to vector<1x128xf32>
      %c0_21 = arith.constant 0 : index
      %c0_22 = arith.constant 0 : index
      %25 = vector.load %arg6[%c0_21, %c0_22] : memref<1x128xf32, #tpu.memory_space<vmem>>, vector<1x128xf32>
      tpu.vector_store %arg6[%c0_21, %c0_22], %24 {strides = array<i32>} : memref<1x128xf32, #tpu.memory_space<vmem>>, vector<1x128xf32>,
    } else {
    }
    %c0 = arith.constant 0 : index
    %c0_1 = arith.constant 0 : index
    %c0_2 = arith.constant 0 : index
    %3 = vector.load %arg2[%c0, %c0_1, %c0_2] : memref<1x8x128xf32, #tpu.memory_space<vmem>>, vector<1x8x128xf32>
    %4 = vector.shape_cast %3 : vector<1x8x128xf32> to vector<8x128xf32>
    %c0_3 = arith.constant 0 : index
    %c0_4 = arith.constant 0 : index
    %c0_5 = arith.constant 0 : index
    %5 = vector.load %arg3[%c0_3, %c0_4, %c0_5] : memref<1x8x128xf32, #tpu.memory_space<vmem>>, vector<1x8x128xf32>
    %6 = vector.shape_cast %5 : vector<1x8x128xf32> to vector<8x128xf32>
    %c0_6 = arith.constant 0 : index
    %c0_7 = arith.constant 0 : index
    %7 = vector.load %arg5[%c0_6, %c0_7] : memref<1x128xf32, #tpu.memory_space<vmem>>, vector<1x128xf32>
    %8 = arith.mulf %4, %6 : vector<8x128xf32>
    %cst = arith.constant dense<0.000000e+00> : vector<128xf32>
    %9 = vector.multi_reduction <add>, %8, %cst [0] : vector<8x128xf32> to vector<128xf32>
    %10 = vector.shape_cast %9 : vector<128xf32> to vector<1x128xf32>
    %11 = arith.addf %7, %10 : vector<1x128xf32>
    %c0_8 = arith.constant 0 : index
    %c0_9 = arith.constant 0 : index
    %12 = vector.load %arg5[%c0_8, %c0_9] : memref<1x128xf32, #tpu.memory_space<vmem>>, vector<1x128xf32>
    tpu.vector_store %arg5[%c0_8, %c0_9], %11 {strides = array<i32>} : memref<1x128xf32, #tpu.memory_space<vmem>>, vector<1x128xf32>,
    %c0_10 = arith.constant 0 : index
    %c0_11 = arith.constant 0 : index
    %13 = vector.load %arg6[%c0_10, %c0_11] : memref<1x128xf32, #tpu.memory_space<vmem>>, vector<1x128xf32>
    %14 = arith.addf %4, %6 : vector<8x128xf32>
    %cst_12 = arith.constant dense<0.000000e+00> : vector<128xf32>
    %15 = vector.multi_reduction <add>, %14, %cst_12 [0] : vector<8x128xf32> to vector<128xf32>
    %16 = vector.shape_cast %15 : vector<128xf32> to vector<1x128xf32>
    %17 = arith.addf %13, %16 : vector<1x128xf32>
    %c0_13 = arith.constant 0 : index
    %c0_14 = arith.constant 0 : index
    %18 = vector.load %arg6[%c0_13, %c0_14] : memref<1x128xf32, #tpu.memory_space<vmem>>, vector<1x128xf32>
    tpu.vector_store %arg6[%c0_13, %c0_14], %17 {strides = array<i32>} : memref<1x128xf32, #tpu.memory_space<vmem>>, vector<1x128xf32>,
    %c0_i32_15 = arith.constant 0 : i32
    %19 = arith.cmpi eq, %arg1, %c0_i32_15 : i32
    %20 = arith.extui %19 : i1 to i32
    %c0_i32_16 = arith.constant 0 : i32
    %21 = arith.cmpi ne, %20, %c0_i32_16 : i32
    scf.if %21 {
      %c0_17 = arith.constant 0 : index
      %c0_18 = arith.constant 0 : index
      %22 = vector.load %arg5[%c0_17, %c0_18] : memref<1x128xf32, #tpu.memory_space<vmem>>, vector<1x128xf32>
      %23 = vector.shape_cast %22 : vector<1x128xf32> to vector<1x1x128xf32>
      %cst_19 = arith.constant dense<0.000000e+00> : vector<1xf32>
      %24 = vector.multi_reduction <add>, %23, %cst_19 [1, 2] : vector<1x1x128xf32> to vector<1xf32>
      %25 = vector.shape_cast %24 : vector<1xf32> to vector<1x1x1xf32>
      %26 = vector.extract %25[0, 0, 0] : f32 from vector<1x1x1xf32>
      %cst_20 = arith.constant 9.99999997E-7 : f32
      %27 = arith.addf %26, %cst_20 : f32
      %c0_21 = arith.constant 0 : index
      %c0_22 = arith.constant 0 : index
      %28 = vector.load %arg6[%c0_21, %c0_22] : memref<1x128xf32, #tpu.memory_space<vmem>>, vector<1x128xf32>
      %29 = vector.shape_cast %28 : vector<1x128xf32> to vector<1x1x128xf32>
      %cst_23 = arith.constant dense<0.000000e+00> : vector<1xf32>
      %30 = vector.multi_reduction <add>, %29, %cst_23 [1, 2] : vector<1x1x128xf32> to vector<1xf32>
      %31 = vector.shape_cast %30 : vector<1xf32> to vector<1x1x1xf32>
      %32 = vector.extract %31[0, 0, 0] : f32 from vector<1x1x1xf32>
      %cst_24 = arith.constant 9.99999997E-7 : f32
      %33 = arith.addf %32, %cst_24 : f32
      %cst_25 = arith.constant 2.000000e+00 : f32
      %34 = arith.mulf %cst_25, %27 : f32
      %35 = arith.divf %34, %33 : f32
      %36 = vector.broadcast %35 : f32 to vector<1x1x128xf32>
      %c0_26 = arith.constant 0 : index
      %c0_27 = arith.constant 0 : index
      %c0_28 = arith.constant 0 : index
      %37 = vector.load %arg4[%c0_26, %c0_27, %c0_28] : memref<1x1x128xf32, #tpu.memory_space<vmem>>, vector<1x1x128xf32>
      tpu.vector_store %arg4[%c0_26, %c0_27, %c0_28], %36 {strides = array<i32>} : memref<1x1x128xf32, #tpu.memory_space<vmem>>, vector<1x1x128xf32>,
    } else {
    }
    return
  }
  func.func @transform_0(%arg0: i32, %arg1: i32) -> (i32, i32, i32) {
    %c0_i32 = arith.constant 0 : i32
    %c0_i32_0 = arith.constant 0 : i32
    return %arg0, %arg1, %c0_i32 : i32, i32, i32
  }
  func.func @transform_1(%arg0: i32, %arg1: i32) -> (i32, i32, i32) {
    %c0_i32 = arith.constant 0 : i32
    %c0_i32_0 = arith.constant 0 : i32
    return %arg0, %arg1, %c0_i32 : i32, i32, i32
  }
  func.func @transform_2(%arg0: i32, %arg1: i32) -> (i32, i32, i32) {
    %c0_i32 = arith.constant 0 : i32
    %c0_i32_0 = arith.constant 0 : i32
    %c0_i32_1 = arith.constant 0 : i32
    return %arg0, %c0_i32, %c0_i32_0 : i32, i32, i32
  }
}

</mosaic_0001>

<bundles_post_ra>
// kernel: tpu_custom_call.1
= control target key start
LH: loop header
LB: loop body
LE: loop exit
PB: predicated region body
PF: predicated region fallthrough
CT: control target
= control target key end

     0   :  { %7 = vsyncpa [#allocation5], 0  ;;  %s807_s0 = inlined_call_operand.hbm [shape: f32[2,8,128], index: 0, kind: input, shape index: {}]   ;;  %s808_s1 = inlined_call_operand.hbm [shape: f32[2,8,128], index: 1, kind: input, shape index: {}]   ;;  %s809_s2 = inlined_call_operand.hbm [shape: f32[2,1,128], index: 2, kind: output, shape index: {}]  }
   0x1   :  { %9 = vsyncpa [#allocation5 + $0x1], 0 }
   0x2   :  { %10 = vsyncpa [#allocation8], 0 }
   0x3   :  { %12 = vsyncpa [#allocation8 + $0x1], 0 }
   0x4   :  { %13 = vsyncpa [#allocation6], 0 }
   0x5   :  { %15 = vsyncpa [#allocation6 + $0x1], 0  ;;  %s639_s9 = smov 0   ;;  %s641_s10 = smov 0  }
   0x6   :  { %s643_s11 = smov 0   ;;  %s645_s12 = smov 0  }
   0x7   :  { %s647_s13 = smov 0   ;;  %s649_s14 = smov 0  }
   0x8 LB: > { %s388_s15 = sadd.s32 4294967295, %s618_s14   ;;  %s389_s16 = sadd.s32 4294967294, %s618_s14   ;;  %s618_s14 = sphi %s649_s14, %s21_s14   ;;  %s614_s13 = sphi %s647_s13, %s821_s13   ;;  %s610_s12 = sphi %s645_s12, %s820_s12   ;;  %s606_s11 = sphi %s643_s11, %s819_s11   ;;  %s602_s10 = sphi %s641_s10, %s818_s10   ;;  %s598_s9 = sphi %s639_s9, %s817_s9  }
   0x9   : > { %s33_s17 = sadd.s32 1, %s614_s13  ;;  %s42_s18 = sadd.s32 1, %s606_s11 }
   0xa   : > { %p35_p0 = scmp.ge.s32.totalorder %s33_s17, 2  ;;  %p49_p1 = scmp.ne.s32.totalorder %s606_s11, %s602_s10 }
   0xb   : > { %p50_p2 = scmp.eq.s32.totalorder %s618_s14, 0  ;;  %p55_p3 = scmp.ne.s32.totalorder %s602_s10, %s598_s9 }
   0xc   : > { %s823_s17 = smov (%p35_p0, %s33_s17), 0  ;;  %p56_p5 = scmp.eq.s32.totalorder %s388_s15, 0 }
   0xd   : > { %p680_p4 = por %p50_p2, %p49_p1  ;;  %s37_s20 = ssub.s32 %s614_s13, %s823_s17 }
   0xe   : > { %p107_p6 = scmp.eq.s32.totalorder %s388_s15, 1  ;;  %p40_p7 = scmp.eq.s32.totalorder %s37_s20, 0 }
   0xf   : > { %p686_p8 = por %p56_p5, %p55_p3  ;;  %p113_p10 = scmp.eq.s32.totalorder %s389_s16, 1 }
  0x10   : > { %p690_p9 = por %p107_p6, %p49_p1  ;;  %p425_p13 = scmp.lt.s32.totalorder %s618_s14, 2 }
  0x11   : > { %s695_s23 = scalar_select %p40_p7, %s606_s11, %s42_s18  }
  0x12   : > { %p697_p11 = por %p113_p10, %p55_p3  ;;  %s704_s25 = sand.u32 1, %s606_s11  }
  0x13   : > { %s392_s26 = sshll.u32 %s704_s25, 3  ;;  %s393_s27 = sshll.u32 %s614_s13, 7 }
  0x14   : > { %s143_s30 = scalar_lea.hbm %s807_s0, %s393_s27  ;;  %s137_s3 = scalar_lea.vmem [#allocation4], %s392_s26 }
  0x15   : > { %s145_s4 = sshll.u32 %s137_s3, 4  ;;  %p713_p0 = pnand %p425_p13, %p680_p4  ;;  %s146_s4 = int_to_ptr.vmem [resolvable:$true] %s145_s4 }
  0x16   : > { %p396_p1 = scmp.ge.s32.totalorder %s618_s14, 1  ;;  %p169_p2 = scmp.lt.s32.totalorder %s618_s14, 3 }
  0x17   : > { %s134_s6 = scalar_lea.sflag [#allocation5], %s704_s25  ;;  %p480_p3 = pneg %p713_p0 }
  0x18   : > { %s491_s7 = scalar_lea.vmem %s146_s4, 128  ;;  %s620_s8 = smov [#allocation4]  }
  0x19   : > { %p492_p5 = scmp.ne.s32.totalorder %s146_s4, %s491_s7  ;;  %s496_s15 = sshll.u32 %s620_s8, 4  ;;  %s497_s15 = int_to_ptr.vmem [resolvable:$false] %s496_s15 }
  0x1a   : > { %s498_s16 = scalar_lea.vmem %s497_s15, 256  ;;  %p499_p4 = scmp.lt.s32.totalorder %s146_s4, %s497_s15 }
  0x1b   : > { %p494_p6 = pnand %p492_p5, %p480_p3  ;;  %p500_p10 = scmp.lt.s32.totalorder %s498_s16, %s491_s7 }
  0x1d   : > { %p495_p7 = pneg %p494_p6  ;;  %p501_p13 = por %p500_p10, %p499_p4 }
  0x1f   : > { %p502_p12 = pnand %p501_p13, %p495_p7 }
  0x21   : > { %505 = shalt.err (!%p502_p12)
}
  0x22   : > { %417 = dma.hbm_to_vmem [thread:$0]  (!%p713_p0), %s143_s30, 128, %s146_s4, %s134_s6  }
  0x23   : > { %p731_p5 = pnand %p396_p1, %p169_p2  ;;  %s162_s28 = scalar_lea.hbm %s808_s1, %s393_s27 }
  0x24   : > { %s156_s29 = scalar_lea.vmem [#allocation7], %s392_s26  ;;  %s153_s7 = scalar_lea.sflag [#allocation8], %s704_s25 }
  0x25   : > { %s164_s3 = sshll.u32 %s156_s29, 4  ;;  %s621_s30 = smov [#allocation7]   ;;  %s165_s3 = int_to_ptr.vmem [resolvable:$true] %s164_s3 }
  0x26   : > { %s519_s8 = scalar_lea.vmem %s165_s3, 128  ;;  %s524_s4 = sshll.u32 %s621_s30, 4  ;;  %s525_s4 = int_to_ptr.vmem [resolvable:$false] %s524_s4 }
  0x27   : > { %p520_p12 = scmp.ne.s32.totalorder %s165_s3, %s519_s8  ;;  %s526_s6 = scalar_lea.vmem %s525_s4, 256 }
  0x28   : > { %p527_p1 = scmp.lt.s32.totalorder %s165_s3, %s525_s4  ;;  %p528_p2 = scmp.lt.s32.totalorder %s526_s6, %s519_s8 }
  0x29   : > { %p522_p6 = pnand %p520_p12, %p480_p3 }
  0x2a   : > { %p529_p4 = por %p528_p2, %p527_p1 }
  0x2b   : > { %p523_p7 = pneg %p522_p6 }
  0x2d   : > { %p530_p10 = pnand %p529_p4, %p523_p7 }
  0x2f   : > { %533 = shalt.err (!%p530_p10)
}
  0x30   : > { %420 = dma.hbm_to_vmem [thread:$0]  (!%p713_p0), %s162_s28, 128, %s165_s3, %s153_s7  }
  0x31   : > { %173 = sbr.rel (%p731_p5) target bundleno = 370 (0x172), region = 28  ;;  %s747_s25 = sand.u32 (!%p731_p5), 1, %s602_s10  }
  0x32   : > { %s397_s26 = sshll.u32 (!%p731_p5), %s747_s25, 3  ;;  %s176_s27 = scalar_lea.sflag (!%p731_p5), [#allocation5], %s747_s25 }
  0x33   : > { %s179_s15 = scalar_lea.vmem (!%p731_p5), [#allocation4], %s397_s26 }
  0x36   : > { %585 = dma.done.wait (%p686_p8), %s176_s27, 128  }
  0x37   : > { %587 = vsyncadd (%p686_p8), %s176_s27, 4294967168  ;;  %s185_s5 = scalar_lea.sflag [#allocation8], %s747_s25  ;;  %s188_s16 = scalar_lea.vmem [#allocation7], %s397_s26 }
  0x38   : > { %589 = dma.done.wait (%p686_p8), %s185_s5, 128  }
  0x39   : > { %591 = vsyncadd (%p686_p8), %s185_s5, 4294967168  ;;  %v622_v0 = vmov 0.0   ;;  %v219_v1 = vld [vmem:[%s179_s15] sm:$0xff]  ;;  %v220_v2 = vld [vmem:[%s188_s16] sm:$0xff]  ;;  %vm245_vm0 = vcmask 1040384   ;;  %s399_s28 = sshll.u32 %s610_s12, 4 }
  0x3a   : > { %217 = vst [vmem:[#allocation2] sm:$0x1] %v622_v0  ;;  %218 = vst [vmem:[#allocation3] sm:$0x1] %v622_v0  ;;  %v222_v3 = vmul.f32 %v220_v2, %v219_v1  ;;  %v232_v4 = vadd.f32 %v220_v2, %v219_v1  ;;  %s212_s3 = scalar_lea.vmem [#allocation9], %s747_s25  ;;  %s765_s26 = scalar_lea.hbm %s809_s2, %s399_s28 }
  0x3b   : > { %s289_s7 = sshll.u32 %s212_s3, 4  ;;  %s277_s27 = scalar_lea.sflag [#allocation6], %s747_s25  ;;  %s290_s7 = int_to_ptr.vmem [resolvable:$true] %s289_s7 }
  0x3c   : > { %v223_v5 = vrot.slane %v222_v3, 4  ;;  %v233_v6 = vrot.slane %v232_v4, 4  ;;  %s534_s15 = scalar_lea.vmem %s290_s7, 16  ;;  %s623_s12 = smov [#allocation9]  }
  0x3d   : > { %p535_p8 = scmp.ne.s32.totalorder %s290_s7, %s534_s15  ;;  %s538_s5 = sshll.u32 %s623_s12, 4  ;;  %s539_s5 = int_to_ptr.vmem [resolvable:$false] %s538_s5 }
  0x3e   : > { %v224_v7 = vadd.f32 %v223_v5, %v222_v3  ;;  %v234_v8 = vadd.f32 %v233_v6, %v232_v4  ;;  %s540_s16 = scalar_lea.vmem %s539_s5, 32  ;;  %p541_p13 = scmp.lt.s32.totalorder %s290_s7, %s539_s5 }
  0x3f   : > { %p536_p0 = pnand %p535_p8, %p690_p9  ;;  %p542_p5 = scmp.lt.s32.totalorder %s540_s16, %s534_s15 }
  0x40   : > { %v225_v9 = vrot.slane %v224_v7, 2  ;;  %v235_v10 = vrot.slane %v234_v8, 2 }
  0x41   : > { %v221_v15 = vld [vmem:[#allocation2] sm:$0x1]  ;;  %v231_v16 = vld [vmem:[#allocation3] sm:$0x1]  ;;  %p537_p3 = pneg %p536_p0  ;;  %p543_p12 = por %p542_p5, %p541_p13 }
  0x42   : > { %v226_v11 = vadd.f32 %v225_v9, %v224_v7  ;;  %v236_v12 = vadd.f32 %v235_v10, %v234_v8 }
  0x43   : > { %p544_p6 = pnand %p543_p12, %p537_p3 }
  0x44   : > { %v227_v13 = vrot.slane %v226_v11, 1  ;;  %v237_v14 = vrot.slane %v236_v12, 1 }
  0x46   : > { %v228_v17 = vadd.f32 %v227_v13, %v226_v11  ;;  %v238_v18 = vadd.f32 %v237_v14, %v236_v12 }
  0x48   : > { %v229_v19 = vadd.f32 %v228_v17, %v221_v15  ;;  %v239_v20 = vadd.f32 %v238_v18, %v231_v16 }
  0x4a   : > { %230 = vst [vmem:[#allocation2] sm:$0x1] %v229_v19  ;;  %240 = vst [vmem:[#allocation3] sm:$0x1] %v239_v20 }
  0x51   : > { %v244_v21 = vld [vmem:[#allocation2] sm:$0x1]  ;;  %v257_v22 = vld [vmem:[#allocation3] sm:$0x1] }
  0x52   : > { %v246_v23 = vsel %vm245_vm0, %v244_v21, 0.0  ;;  %v258_v24 = vsel %vm245_vm0, %v257_v22, 0.0 }
  0x53   : > { %247 = vadd.xlane.f32.xlu0 %v246_v23 }
  0x57   : > { %259 = vadd.xlane.f32.xlu0 %v258_v24 }
  0xdc   : > { %v248_v25 = vpop.xlane.xlu0 %247 }
  0xdd   : > { %v249_v26 = vrot.slane %v248_v25, 4 }
  0xdf   : > { %v250_v27 = vadd.f32 %v249_v26, %v248_v25 }
  0xe0   : > { %v260_v28 = vpop.xlane.xlu0 %259 }
  0xe1   : > { %v251_v29 = vrot.slane %v250_v27, 2  ;;  %v261_v30 = vrot.slane %v260_v28, 4 }
  0xe3   : > { %v262_v31 = vadd.f32 %v261_v30, %v260_v28  ;;  %v252_v32 = vadd.f32 %v251_v29, %v250_v27 }
  0xe5   : > { %v263_v33 = vrot.slane %v262_v31, 2  ;;  %v253_v34 = vrot.slane %v252_v32, 1 }
  0xe7   : > { %v264_v35 = vadd.f32 %v263_v33, %v262_v31  ;;  %v254_v36 = vadd.f32 %v253_v34, %v252_v32 }
  0xe9   : > { %402 = vpush %v254_v36  ;;  %v265_v37 = vrot.slane %v264_v35, 1 }
  0xeb   : > { %v266_v38 = vadd.f32 %v265_v37, %v264_v35 }
  0xed   : > { %404 = vpush %v266_v38 }
 0x11a   : > { %s403_s21 = spop %402 }
 0x11b   : > { %s256_s20 = sadd.f32 1e-06, %s403_s21 }
 0x11d   : > { %s269_s29 = smul.f32 2.0, %s256_s20 }
 0x11e   : > { %s405_s18 = spop %404 }
 0x11f   : > { %s268_s19 = sadd.f32 1e-06, %s405_s18 }
 0x121   : > { %v270_v39 = vstv %s268_s19 }
 0x122   : > { %476 = vrcp.f32 %v270_v39 }
 0x12f   : > { %v477_v40 = vpop.eup %476 }
 0x130   : > { %406 = vpush %v477_v40 }
 0x161   : > { %s407_s8 = spop %406 }
 0x162   : > { %s273_s30 = smul.f32 %s407_s8, %s269_s29 }
 0x164   : > { %v274_v41 = vstv %s273_s30 }
 0x165   : > { %275 = vst [vmem:[%s212_s3] sm:$0x1] %v274_v41 }
 0x166   : > { %547 = shalt.err (!%p544_p6)
}
 0x167   : > { %s548_s21 = scalar_lea.hbm %s765_s26, 16  ;;  %s552_s19 = scalar_lea.hbm %s809_s2, 32 }
 0x168   : > { %p549_p7 = scmp.ne.s32.totalorder %s765_s26, %s548_s21  ;;  %p553_p4 = scmp.lt.s32.totalorder %s765_s26, %s809_s2 }
 0x169   : > { %p554_p10 = scmp.lt.s32.totalorder %s552_s19, %s548_s21 }
 0x16a   : > { %p550_p1 = pnand %p549_p7, %p690_p9 }
 0x16b   : > { %p555_p8 = por %p554_p10, %p553_p4 }
 0x16c   : > { %p551_p2 = pneg %p550_p1 }
 0x16e   : > { %p556_p0 = pnand %p555_p8, %p551_p2 }
 0x170   : > { %559 = shalt.err (!%p556_p0)
}
 0x171   : > { %412 = dma.vmem_to_hbm [thread:$0]  (%p690_p9), %s290_s7, 16, %s765_s26, %s277_s27  }
 0x172 PF: > { %s301_s29 = sand.u32 1, %s598_s9   ;;  %p816_p3 = scmp.ge.s32.totalorder %s618_s14, 2 }
 0x173   : > { %s302_s3 = scalar_lea.sflag [#allocation6], %s301_s29 }
 0x174   : > { %p422_p13 = pnand %p816_p3, %p697_p11 }
 0x176   : > { %p423_p5 = pneg %p422_p13 }
 0x178   : > { %593 = dma.done.wait (%p423_p5), %s302_s3, 16  }
 0x179   : > { %595 = vsyncadd (%p423_p5), %s302_s3, 4294967280  ;;  %s21_s14 = sadd.s32 1, %s618_s14   ;;  %s817_s9 = smov %s602_s10 }
 0x17a   : > { %p18_p12 = scmp.ge.s32.totalorder %s21_s14, 4   ;;  %s818_s10 = smov %s606_s11 }
 0x17b   : > { %s819_s11 = smov %s695_s23  ;;  %s820_s12 = smov %s614_s13 }
 0x17c   : > { %s821_s13 = smov %s823_s17  ;;  %20 = sbr.rel (!%p18_p12) target bundleno = 8 (0x8), region = 94 }
 0x181   :  { %306 = vsyncpa [#allocation5], 1 }
 0x182   :  { %308 = vsyncpa [#allocation5 + $0x1], 1 }
 0x183   :  { %309 = vsyncpa [#allocation8], 1 }
 0x184   :  { %311 = vsyncpa [#allocation8 + $0x1], 1 }
 0x185   :  { %312 = vsyncpa [#allocation6], 1 }
 0x186   :  { %314 = vsyncpa [#allocation6 + $0x1], 1 }

</bundles_post_ra>
